<compile_context>
chip_gen: v7x
topology: tpu7x:2x2x1
jax: 0.10.0
libtpu: 0.0.40
codegen_flags: <defaults>
</compile_context>

<pallas_src>
import functools

import jax
import jax.numpy as jnp
import numpy as np
from jax.experimental import pallas as pl
from jax.experimental.pallas import tpu as pltpu

LANES = 128                 # lane-dense last dim
SUBBLOCK = 8 * LANES        # padding granularity: one (8,128) f32 vreg tile
DEFAULT_TILE_R = 4096       # sublane rows per tile -> (4096,128) f32 = 2 MiB


def _default_num_splits() -> int:
    """2 parallel splits only on 2-TensorCore chips (v7x); 1 otherwise."""
    try:
        kind = jax.devices()[0].device_kind.lower()
    except Exception:
        return 1
    return 2 if ("v7" in kind or "tpu7" in kind or "7x" in kind) else 1


def _sparse_mse_kernel(cls_ref, reg_ref, lab_ref, out_ref, acc_ref, *,
                       log_threshold: float, alpha: float,
                       num_tiles: int, tiles_per_split: int,
                       valid_in_last_block: int):
    """Fused per-element loss, (8,128) accumulator, one reduce per split."""
    p = pl.program_id(0)                       # parallel split
    i = pl.program_id(1)                       # row-tile within split
    g = p * tiles_per_split + i                # global row-tile index

    @pl.when(i == 0)
    def _init():
        acc_ref[...] = jnp.zeros_like(acc_ref)

    x = cls_ref[...].astype(jnp.float32)       # classification logits
    r = reg_ref[...].astype(jnp.float32)       # regression outputs
    y = lab_ref[...].astype(jnp.float32)       # log-TPM labels

    # MSE term.
    diff = r - y
    # Numerically-stable BCE-with-logits: max(x,0) - x*1[y>=thr] + log1p(exp(-|x|)).
    # One select replaces compare+cast+multiply.
    xy = jnp.where(y >= log_threshold, x, 0.0)
    bce = jnp.maximum(x, 0.0) - xy + jnp.log1p(jnp.exp(-jnp.abs(x)))

    # Single fused weighted per-element term.
    loss_elem = (1.0 - alpha) * (diff * diff) + alpha * bce

    tile_r, lanes = cls_ref.shape

    # Steady state: every tile except the last one is fully valid -> no mask.
    @pl.when(g < num_tiles - 1)
    def _steady():
        acc_ref[...] += loss_elem.reshape(-1, 8, lanes).sum(axis=0)

    # Tail: only the globally-last tile can contain padded / ragged garbage.
    # Uses small in-block indices (no int32-overflow risk for huge inputs).
    @pl.when(g == num_tiles - 1)
    def _tail():
        ridx = jax.lax.broadcasted_iota(jnp.int32, (tile_r, lanes), 0)
        lidx = jax.lax.broadcasted_iota(jnp.int32, (tile_r, lanes), 1)
        in_block = ridx * lanes + lidx
        masked = jnp.where(in_block < valid_in_last_block, loss_elem, 0.0)
        acc_ref[...] += masked.reshape(-1, 8, lanes).sum(axis=0)

    # Tiles with g > num_tiles - 1 are phantom (clamped DMA) -> skipped above.

    @pl.when(i == pl.num_programs(1) - 1)
    def _finalize():
        # Single cross-lane/sublane reduce per split, epilogue only.
        part = jnp.sum(acc_ref[...])
        out_ref[...] = jnp.full(out_ref.shape, part, jnp.float32)


def _reference(cls_out, reg_out, labels, threshold=1.0, alpha=0.5):
    """Pure-JAX reference (also the small-input fast path)."""
    x = cls_out.astype(jnp.float32)
    r = reg_out.astype(jnp.float32)
    y = labels.astype(jnp.float32)
    log_thr = float(np.log(threshold))
    bin_y = (y >= log_thr).astype(jnp.float32)
    mse = jnp.mean((r - y) ** 2)
    bce = jnp.mean(jnp.maximum(x, 0.0) - x * bin_y + jnp.log1p(jnp.exp(-jnp.abs(x))))
    return alpha * bce + (1.0 - alpha) * mse


def sparse_mse_loss(classification_outputs: jax.Array,
                    regression_outputs: jax.Array,
                    labels: jax.Array,
                    *,
                    threshold: float = 1.0,
                    alpha: float = 0.5,
                    tile_rows: int = DEFAULT_TILE_R,
                    num_splits: int | None = None,
                    min_pallas_elems: int = 65536) -> jax.Array:
    """Pallas-backed SparseMSELoss.forward((cls, reg), labels)."""
    assert classification_outputs.shape == regression_outputs.shape == labels.shape
    assert threshold > 0.0, "threshold must be > 0 (log-scale binarization)"

    n_valid = int(np.prod(labels.shape))
    log_threshold = float(np.log(threshold))
    alpha = float(alpha)

    # Tiny inputs: pallas_call overhead dwarfs the work; use fused XLA path.
    if n_valid < min_pallas_elems:
        return _reference(classification_outputs, regression_outputs, labels,
                          threshold=threshold, alpha=alpha)

    # --- Lane-dense layout: pad only to a multiple of 8*128 (no pad copy in
    # the common aligned case), reshape to (rows, 128). ---
    pad = (-n_valid) % SUBBLOCK
    padded_n = n_valid + pad
    rows = padded_n // LANES                      # multiple of 8, >= 8

    tile_rows = max(8, (int(tile_rows) // 8) * 8)
    tile_r = min(tile_rows, rows)                 # multiple of 8, <= rows
    num_tiles = pl.cdiv(rows, tile_r)

    if num_splits is None:
        num_splits = _default_num_splits()
    num_splits = max(1, min(int(num_splits), num_tiles))
    tiles_per_split = pl.cdiv(num_tiles, num_splits)

    # Valid elements in the globally-last tile (covers pad + ragged rows).
    valid_in_last_block = n_valid - (num_tiles - 1) * tile_r * LANES

    def _prep(a):
        flat = a.reshape(-1)
        if pad:
            flat = jnp.pad(flat, (0, pad))        # rare; masked inside kernel
        return flat.reshape(rows, LANES)          # native dtype, no upcast

    cls2d = _prep(classification_outputs)
    reg2d = _prep(regression_outputs)
    lab2d = _prep(labels)

    def in_map(p, i):
        # Clamp phantom tiles (when num_tiles % num_splits != 0) to a valid
        # block; the kernel skips their contribution.
        return (jnp.minimum(p * tiles_per_split + i, num_tiles - 1), 0)

    def out_map(p, i):
        return (p, 0)

    kernel = functools.partial(
        _sparse_mse_kernel,
        log_threshold=log_threshold,
        alpha=alpha,
        num_tiles=int(num_tiles),
        tiles_per_split=int(tiles_per_split),
        valid_in_last_block=int(valid_in_last_block),
    )

    # VMEM budget: 3 double-buffered input tiles + tiny accumulator + headroom.
    tile_elems = tile_r * LANES
    in_buf_bytes = sum(2 * tile_elems * jnp.dtype(a.dtype).itemsize
                       for a in (cls2d, reg2d, lab2d))
    vmem_limit = int(in_buf_bytes + (16 << 20))

    total_in_bytes = sum(int(a.size) * jnp.dtype(a.dtype).itemsize
                         for a in (cls2d, reg2d, lab2d))
    cost = pl.CostEstimate(
        flops=12 * n_valid,
        transcendentals=2 * n_valid,
        bytes_accessed=total_in_bytes + num_splits * 8 * LANES * 4,
    )

    partials = pl.pallas_call(
        kernel,
        out_shape=jax.ShapeDtypeStruct((num_splits * 8, LANES), jnp.float32),
        grid_spec=pltpu.PrefetchScalarGridSpec(
            num_scalar_prefetch=0,
            grid=(num_splits, tiles_per_split),
            in_specs=[
                pl.BlockSpec((tile_r, LANES), in_map),   # classification logits
                pl.BlockSpec((tile_r, LANES), in_map),   # regression outputs
                pl.BlockSpec((tile_r, LANES), in_map),   # labels
            ],
            out_specs=pl.BlockSpec((8, LANES), out_map), # per-split partial sum
            scratch_shapes=[pltpu.VMEM((8, LANES), jnp.float32)],
        ),
        compiler_params=pltpu.CompilerParams(
            dimension_semantics=("parallel", "arbitrary"),
            vmem_limit_bytes=vmem_limit,
        ),
        cost_estimate=cost,
    )(cls2d, reg2d, lab2d)

    # Every element of a split's (8,128) block holds that split's partial sum.
    per_split = partials.reshape(num_splits, 8, LANES)[:, 0, 0]
    return jnp.sum(per_split) / jnp.float32(n_valid)


if __name__ == "__main__":
    key = jax.random.PRNGKey(0)
    ks = jax.random.split(key, 9)

    # --- Test 1: small module-consistent shape (batch=2, num_labels=32), f32.
    # Force the Pallas path so the kernel itself is exercised.
    batch, num_labels = 2, 32
    cls1 = jax.random.normal(ks[0], (batch, num_labels), jnp.float32)
    reg1 = jax.random.normal(ks[1], (batch, num_labels), jnp.float32)
    lab1 = 2.0 * jax.random.normal(ks[2], (batch, num_labels), jnp.float32)

    loss1 = jax.block_until_ready(
        sparse_mse_loss(cls1, reg1, lab1, threshold=1.0, alpha=0.5,
                        min_pallas_elems=0))
    ref1 = _reference(cls1, reg1, lab1, threshold=1.0, alpha=0.5)
    np.testing.assert_allclose(np.asarray(loss1), np.asarray(ref1),
                               rtol=1e-5, atol=1e-6)

    # --- Test 2: bf16 inputs (streamed narrow, upcast in-kernel), aligned
    # size (no pad), multiple row tiles via a small tile_rows override.
    batch, num_labels = 64, 256
    cls2 = jax.random.normal(ks[3], (batch, num_labels), jnp.bfloat16)
    reg2 = jax.random.normal(ks[4], (batch, num_labels), jnp.bfloat16)
    lab2 = (2.0 * jax.random.normal(ks[5], (batch, num_labels), jnp.float32)
            ).astype(jnp.bfloat16)

    loss2 = jax.block_until_ready(
        sparse_mse_loss(cls2, reg2, lab2, threshold=2.0, alpha=0.3,
                        min_pallas_elems=0, tile_rows=32))
    ref2 = _reference(cls2, reg2, lab2, threshold=2.0, alpha=0.3)
    np.testing.assert_allclose(np.asarray(loss2), np.asarray(ref2),
                               rtol=2e-4, atol=2e-5)

    # --- Test 3: misaligned size (padded + ragged last tile) with 2 parallel
    # splits (exercises the clamped phantom-tile path; correct on any chip).
    batch, num_labels = 2, 2087
    cls3 = jax.random.normal(ks[6], (batch, num_labels), jnp.float32)
    reg3 = jax.random.normal(ks[7], (batch, num_labels), jnp.float32)
    lab3 = 2.0 * jax.random.normal(ks[8], (batch, num_labels), jnp.float32)

    loss3 = jax.block_until_ready(
        sparse_mse_loss(cls3, reg3, lab3, threshold=1.5, alpha=0.7,
                        min_pallas_elems=0, tile_rows=8, num_splits=2))
    ref3 = _reference(cls3, reg3, lab3, threshold=1.5, alpha=0.7)
    np.testing.assert_allclose(np.asarray(loss3), np.asarray(ref3),
                               rtol=1e-5, atol=1e-6)

    print("KERNEL_OK")
</pallas_src>

<mosaic_0001>
module attributes {stable_mosaic.version = 11 : i64} {
  func.func @_sparse_mse_kernel(%arg0: i32, %arg1: i32, %arg2: memref<8x128xf32, #tpu.memory_space<vmem>>, %arg3: memref<8x128xf32, #tpu.memory_space<vmem>>, %arg4: memref<8x128xf32, #tpu.memory_space<vmem>>, %arg5: memref<8x128xf32, #tpu.memory_space<vmem>>, %arg6: memref<8x128xf32, #tpu.memory_space<vmem>>) attributes {dimension_semantics = [#tpu.dimension_semantics<parallel>, #tpu.dimension_semantics<arbitrary>], iteration_bounds = array<i64: 1, 1>, scalar_prefetch = 0 : i64, scratch_operands = 1 : i64, tpu.core_type = #tpu.core_type<tc>, window_params = [{transform_indices = @transform_0, window_bounds = array<i64: 8, 128>}, {transform_indices = @transform_1, window_bounds = array<i64: 8, 128>}, {transform_indices = @transform_2, window_bounds = array<i64: 8, 128>}, {transform_indices = @transform_3, window_bounds = array<i64: 8, 128>}]} {
    %c1_i32 = arith.constant 1 : i32
    %0 = arith.muli %arg0, %c1_i32 : i32
    %1 = arith.addi %0, %arg1 : i32
    %c0_i32 = arith.constant 0 : i32
    %2 = arith.cmpi eq, %arg1, %c0_i32 : i32
    %3 = arith.extui %2 : i1 to i32
    %c0_i32_0 = arith.constant 0 : i32
    %4 = arith.cmpi ne, %3, %c0_i32_0 : i32
    scf.if %4 {
      %cst_17 = arith.constant 0.000000e+00 : f32
      %37 = vector.broadcast %cst_17 : f32 to vector<8x128xf32>
      %c0_18 = arith.constant 0 : index
      %c0_19 = arith.constant 0 : index
      %38 = vector.load %arg6[%c0_18, %c0_19] : memref<8x128xf32, #tpu.memory_space<vmem>>, vector<8x128xf32>
      tpu.vector_store %arg6[%c0_18, %c0_19], %37 {strides = array<i32>} : memref<8x128xf32, #tpu.memory_space<vmem>>, vector<8x128xf32>,
    } else {
    }
    %c0 = arith.constant 0 : index
    %c0_1 = arith.constant 0 : index
    %5 = vector.load %arg2[%c0, %c0_1] : memref<8x128xf32, #tpu.memory_space<vmem>>, vector<8x128xf32>
    %c0_2 = arith.constant 0 : index
    %c0_3 = arith.constant 0 : index
    %6 = vector.load %arg3[%c0_2, %c0_3] : memref<8x128xf32, #tpu.memory_space<vmem>>, vector<8x128xf32>
    %c0_4 = arith.constant 0 : index
    %c0_5 = arith.constant 0 : index
    %7 = vector.load %arg4[%c0_4, %c0_5] : memref<8x128xf32, #tpu.memory_space<vmem>>, vector<8x128xf32>
    %8 = arith.subf %6, %7 : vector<8x128xf32>
    %cst = arith.constant 0.000000e+00 : f32
    %9 = vector.broadcast %cst : f32 to vector<8x128xf32>
    %10 = arith.cmpf oge, %7, %9 : vector<8x128xf32>
    %cst_6 = arith.constant 0.000000e+00 : f32
    %11 = vector.broadcast %cst_6 : f32 to vector<8x128xf32>
    %12 = arith.select %10, %5, %11 : vector<8x128xi1>, vector<8x128xf32>
    %cst_7 = arith.constant 0.000000e+00 : f32
    %13 = vector.broadcast %cst_7 : f32 to vector<8x128xf32>
    %14 = arith.maximumf %5, %13 : vector<8x128xf32>
    %15 = arith.subf %14, %12 : vector<8x128xf32>
    %16 = math.absf %5 : vector<8x128xf32>
    %cst_8 = arith.constant 0.000000e+00 : f32
    %17 = vector.broadcast %cst_8 : f32 to vector<8x128xf32>
    %18 = arith.subf %17, %16 : vector<8x128xf32>
    %19 = math.exp %18 : vector<8x128xf32>
    %20 = math.log1p %19 : vector<8x128xf32>
    %21 = arith.addf %15, %20 : vector<8x128xf32>
    %22 = arith.mulf %8, %8 : vector<8x128xf32>
    %cst_9 = arith.constant 5.000000e-01 : f32
    %23 = vector.broadcast %cst_9 : f32 to vector<8x128xf32>
    %24 = arith.mulf %23, %22 : vector<8x128xf32>
    %cst_10 = arith.constant 5.000000e-01 : f32
    %25 = vector.broadcast %cst_10 : f32 to vector<8x128xf32>
    %26 = arith.mulf %25, %21 : vector<8x128xf32>
    %27 = arith.addf %24, %26 : vector<8x128xf32>
    %c0_i32_11 = arith.constant 0 : i32
    %28 = arith.cmpi slt, %1, %c0_i32_11 : i32
    %29 = arith.extui %28 : i1 to i32
    %c0_i32_12 = arith.constant 0 : i32
    %30 = arith.cmpi ne, %29, %c0_i32_12 : i32
    scf.if %30 {
      %c0_17 = arith.constant 0 : index
      %c0_18 = arith.constant 0 : index
      %37 = vector.load %arg6[%c0_17, %c0_18] : memref<8x128xf32, #tpu.memory_space<vmem>>, vector<8x128xf32>
      %38 = vector.shape_cast %27 : vector<8x128xf32> to vector<1x8x128xf32>
      %cst_19 = arith.constant dense<0.000000e+00> : vector<8x128xf32>
      %39 = vector.multi_reduction <add>, %38, %cst_19 [0] : vector<1x8x128xf32> to vector<8x128xf32>
      %40 = arith.addf %37, %39 : vector<8x128xf32>
      %c0_20 = arith.constant 0 : index
      %c0_21 = arith.constant 0 : index
      %41 = vector.load %arg6[%c0_20, %c0_21] : memref<8x128xf32, #tpu.memory_space<vmem>>, vector<8x128xf32>
      tpu.vector_store %arg6[%c0_20, %c0_21], %40 {strides = array<i32>} : memref<8x128xf32, #tpu.memory_space<vmem>>, vector<8x128xf32>,
    } else {
    }
    %c0_i32_13 = arith.constant 0 : i32
    %31 = arith.cmpi eq, %1, %c0_i32_13 : i32
    %32 = arith.extui %31 : i1 to i32
    %c0_i32_14 = arith.constant 0 : i32
    %33 = arith.cmpi ne, %32, %c0_i32_14 : i32
    scf.if %33 {
      %37 = tpu.iota {dimensions = array<i32: 0>} : vector<8x128xi32>
      %38 = tpu.iota {dimensions = array<i32: 1>} : vector<8x128xi32>
      %c128_i32 = arith.constant 128 : i32
      %39 = vector.broadcast %c128_i32 : i32 to vector<8x128xi32>
      %40 = arith.muli %37, %39 : vector<8x128xi32>
      %41 = arith.addi %40, %38 : vector<8x128xi32>
      %c64_i32 = arith.constant 64 : i32
      %42 = vector.broadcast %c64_i32 : i32 to vector<8x128xi32>
      %43 = arith.cmpi slt, %41, %42 : vector<8x128xi32>
      %cst_17 = arith.constant 0.000000e+00 : f32
      %44 = vector.broadcast %cst_17 : f32 to vector<8x128xf32>
      %45 = arith.select %43, %27, %44 : vector<8x128xi1>, vector<8x128xf32>
      %c0_18 = arith.constant 0 : index
      %c0_19 = arith.constant 0 : index
      %46 = vector.load %arg6[%c0_18, %c0_19] : memref<8x128xf32, #tpu.memory_space<vmem>>, vector<8x128xf32>
      %47 = vector.shape_cast %45 : vector<8x128xf32> to vector<1x8x128xf32>
      %cst_20 = arith.constant dense<0.000000e+00> : vector<8x128xf32>
      %48 = vector.multi_reduction <add>, %47, %cst_20 [0] : vector<1x8x128xf32> to vector<8x128xf32>
      %49 = arith.addf %46, %48 : vector<8x128xf32>
      %c0_21 = arith.constant 0 : index
      %c0_22 = arith.constant 0 : index
      %50 = vector.load %arg6[%c0_21, %c0_22] : memref<8x128xf32, #tpu.memory_space<vmem>>, vector<8x128xf32>
      tpu.vector_store %arg6[%c0_21, %c0_22], %49 {strides = array<i32>} : memref<8x128xf32, #tpu.memory_space<vmem>>, vector<8x128xf32>,
    } else {
    }
    %c0_i32_15 = arith.constant 0 : i32
    %34 = arith.cmpi eq, %arg1, %c0_i32_15 : i32
    %35 = arith.extui %34 : i1 to i32
    %c0_i32_16 = arith.constant 0 : i32
    %36 = arith.cmpi ne, %35, %c0_i32_16 : i32
    scf.if %36 {
      %c0_17 = arith.constant 0 : index
      %c0_18 = arith.constant 0 : index
      %37 = vector.load %arg6[%c0_17, %c0_18] : memref<8x128xf32, #tpu.memory_space<vmem>>, vector<8x128xf32>
      %38 = vector.shape_cast %37 : vector<8x128xf32> to vector<1x8x128xf32>
      %cst_19 = arith.constant dense<0.000000e+00> : vector<1xf32>
      %39 = vector.multi_reduction <add>, %38, %cst_19 [1, 2] : vector<1x8x128xf32> to vector<1xf32>
      %40 = vector.shape_cast %39 : vector<1xf32> to vector<1x1x1xf32>
      %41 = vector.extract %40[0, 0, 0] : f32 from vector<1x1x1xf32>
      %42 = vector.broadcast %41 : f32 to vector<8x128xf32>
      %c0_20 = arith.constant 0 : index
      %c0_21 = arith.constant 0 : index
      %43 = vector.load %arg5[%c0_20, %c0_21] : memref<8x128xf32, #tpu.memory_space<vmem>>, vector<8x128xf32>
      tpu.vector_store %arg5[%c0_20, %c0_21], %42 {strides = array<i32>} : memref<8x128xf32, #tpu.memory_space<vmem>>, vector<8x128xf32>,
    } else {
    }
    return
  }
  func.func @transform_0(%arg0: i32, %arg1: i32) -> (i32, i32) {
    %c1_i32 = arith.constant 1 : i32
    %0 = arith.muli %arg0, %c1_i32 : i32
    %1 = arith.addi %0, %arg1 : i32
    %c0_i32 = arith.constant 0 : i32
    %2 = arith.minsi %1, %c0_i32 : i32
    %c0_i32_0 = arith.constant 0 : i32
    %c0_i32_1 = arith.constant 0 : i32
    return %2, %c0_i32_0 : i32, i32
  }
  func.func @transform_1(%arg0: i32, %arg1: i32) -> (i32, i32) {
    %c1_i32 = arith.constant 1 : i32
    %0 = arith.muli %arg0, %c1_i32 : i32
    %1 = arith.addi %0, %arg1 : i32
    %c0_i32 = arith.constant 0 : i32
    %2 = arith.minsi %1, %c0_i32 : i32
    %c0_i32_0 = arith.constant 0 : i32
    %c0_i32_1 = arith.constant 0 : i32
    return %2, %c0_i32_0 : i32, i32
  }
  func.func @transform_2(%arg0: i32, %arg1: i32) -> (i32, i32) {
    %c1_i32 = arith.constant 1 : i32
    %0 = arith.muli %arg0, %c1_i32 : i32
    %1 = arith.addi %0, %arg1 : i32
    %c0_i32 = arith.constant 0 : i32
    %2 = arith.minsi %1, %c0_i32 : i32
    %c0_i32_0 = arith.constant 0 : i32
    %c0_i32_1 = arith.constant 0 : i32
    return %2, %c0_i32_0 : i32, i32
  }
  func.func @transform_3(%arg0: i32, %arg1: i32) -> (i32, i32) {
    %c0_i32 = arith.constant 0 : i32
    %c0_i32_0 = arith.constant 0 : i32
    return %arg0, %c0_i32 : i32, i32
  }
}

</mosaic_0001>

<bundles_post_ra>
// kernel: tpu_custom_call.1
= control target key start
LH: loop header
LB: loop body
LE: loop exit
PB: predicated region body
PF: predicated region fallthrough
CT: control target
= control target key end

     0   :  { %8 = vsyncpa [#allocation4], 0  ;;  %s343_s0 = inlined_call_operand.hbm [shape: f32[8,128], index: 0, kind: input, shape index: {}]   ;;  %s344_s1 = inlined_call_operand.hbm [shape: f32[8,128], index: 1, kind: input, shape index: {}]   ;;  %s345_s2 = inlined_call_operand.hbm [shape: f32[8,128], index: 2, kind: input, shape index: {}]   ;;  %s346_s3 = inlined_call_operand.hbm [shape: f32[8,128], index: 3, kind: output, shape index: {}]  }
   0x1   :  { %9 = vsyncpa [#allocation7], 0 }
   0x2   :  { %10 = vsyncpa [#allocation5], 0  ;;  %s271_s12 = smov [#allocation6]   ;;  %s272_s14 = smov [#allocation3]  }
   0x3   :  { %s37_s13 = sshll.u32 %s271_s12, 4  ;;  %s22_s15 = sshll.u32 %s272_s14, 4  ;;  %s38_s13 = int_to_ptr.vmem [resolvable:$true] %s37_s13  ;;  %s23_s15 = int_to_ptr.vmem [resolvable:$true] %s22_s15 }
   0x4   :  { %s177_s18 = scalar_lea.hbm %s344_s1, 128 }
   0x5   :  { %p178_p0 = scmp.ne.s32.totalorder %s344_s1, %s177_s18  ;;  %p181_p1 = scmp.lt.u32.totalorder %s177_s18, %s344_s1 }
   0x7   :  { %p183_p2 = pnand %p181_p1, %p178_p0 }
   0x9   :  { %186 = shalt.err (!%p183_p2)
}
   0xa   :  { %s187_s23 = scalar_lea.vmem %s38_s13, 128  ;;  %p192_p4 = scmp.lt.s32.totalorder %s38_s13, %s38_s13 }
   0xb   :  { %p188_p3 = scmp.ne.s32.totalorder %s38_s13, %s187_s23  ;;  %p193_p5 = scmp.lt.s32.totalorder %s187_s23, %s187_s23 }
   0xd   :  { %p194_p6 = por %p193_p5, %p192_p4 }
   0xf   :  { %p195_p7 = pnand %p194_p6, %p188_p3 }
  0x11   :  { %198 = shalt.err (!%p195_p7)
}
  0x12   :  { %40 = dma.hbm_to_vmem [thread:$0]  %s344_s1, 128, %s38_s13, [#allocation7]  }
  0x13   :  { %s199_s28 = scalar_lea.hbm %s343_s0, 128 }
  0x14   :  { %p200_p8 = scmp.ne.s32.totalorder %s343_s0, %s199_s28  ;;  %p203_p9 = scmp.lt.u32.totalorder %s199_s28, %s343_s0 }
  0x16   :  { %p205_p10 = pnand %p203_p9, %p200_p8 }
  0x18   :  { %208 = shalt.err (!%p205_p10)
}
  0x19   :  { %s209_s6 = scalar_lea.vmem %s23_s15, 128  ;;  %p214_p12 = scmp.lt.s32.totalorder %s23_s15, %s23_s15 }
  0x1a   :  { %p210_p11 = scmp.ne.s32.totalorder %s23_s15, %s209_s6  ;;  %p215_p13 = scmp.lt.s32.totalorder %s209_s6, %s209_s6 }
  0x1c   :  { %p216_p0 = por %p215_p13, %p214_p12 }
  0x1e   :  { %p217_p1 = pnand %p216_p0, %p210_p11 }
  0x20   :  { %220 = shalt.err (!%p217_p1)
}
  0x21   :  { %25 = dma.hbm_to_vmem [thread:$0]  %s343_s0, 128, %s23_s15, [#allocation4]  }
  0x22   :  { %s273_s8 = smov [#allocation8]   ;;  %s221_s12 = scalar_lea.hbm %s345_s2, 128 }
  0x23   :  { %s52_s9 = sshll.u32 %s273_s8, 4  ;;  %p222_p2 = scmp.ne.s32.totalorder %s345_s2, %s221_s12  ;;  %s53_s9 = int_to_ptr.vmem [resolvable:$true] %s52_s9 }
  0x24   :  { %p225_p3 = scmp.lt.u32.totalorder %s221_s12, %s345_s2 }
  0x26   :  { %p227_p4 = pnand %p225_p3, %p222_p2 }
  0x28   :  { %230 = shalt.err (!%p227_p4)
}
  0x29   :  { %s231_s18 = scalar_lea.vmem %s53_s9, 128  ;;  %p236_p6 = scmp.lt.s32.totalorder %s53_s9, %s53_s9 }
  0x2a   :  { %p232_p5 = scmp.ne.s32.totalorder %s53_s9, %s231_s18  ;;  %p237_p7 = scmp.lt.s32.totalorder %s231_s18, %s231_s18 }
  0x2c   :  { %p238_p8 = por %p237_p7, %p236_p6 }
  0x2e   :  { %p239_p9 = pnand %p238_p8, %p232_p5 }
  0x30   :  { %242 = shalt.err (!%p239_p9)
}
  0x31   :  { %55 = dma.hbm_to_vmem [thread:$0]  %s345_s2, 128, %s53_s9, [#allocation7]  }
  0x32   :  { %265 = dma.done.wait [#allocation4], 128  }
  0x33   :  { %266 = vsyncadd [#allocation4], 4294967168 }
  0x34   :  { %267 = dma.done.wait [#allocation7], 256  }
  0x35   :  { %268 = vsyncadd [#allocation7], 4294967040  ;;  %v80_v0 = vld [vmem:[#allocation3] sm:$0xff]  ;;  %v82_v6 = vld [vmem:[#allocation8] sm:$0xff]  ;;  %v118_v8 = vlaneseq  ;;  %s274_s2 = smov [#allocation9]  }
  0x36   :  { %v88_v1 = vand.u32 2147483647, %v80_v0  ;;  %v81_v9 = vld [vmem:[#allocation6] sm:$0xff]  ;;  %vm84_vm0 = vcmp.ge.f32.partialorder %v82_v6, 0.0  ;;  %v86_v13 = vmax.f32 %v80_v0, 0.0  ;;  %s151_s19 = sshll.u32 %s274_s2, 4  ;;  %s152_s19 = int_to_ptr.vmem [resolvable:$true] %s151_s19 }
  0x37   :  { %v119_v11 = vshrl.u32 %v118_v8, 7  ;;  %v83_v12 = vsub.f32 %v81_v9, %v82_v6  ;;  %v85_v15 = vsel %vm84_vm0, %v80_v0, 0.0  ;;  %v121_v17 = vand.u32 127, %v118_v8  ;;  %s243_s21 = scalar_lea.vmem %s152_s19, 128  ;;  %p248_p11 = scmp.lt.s32.totalorder %s152_s19, %s152_s19 }
  0x38   :  { %v89_v2 = vsub.f32 0.0, %v88_v1  ;;  %v87_v20 = vsub.f32 %v86_v13, %v85_v15  ;;  %p244_p10 = scmp.ne.s32.totalorder %s152_s19, %s243_s21  ;;  %p249_p12 = scmp.lt.s32.totalorder %s243_s21, %s243_s21 }
  0x39   :  { %v122_v18 = vmul.u32 128, %v119_v11  ;;  %v102_v21 = vmul.f32 %v83_v12, %v83_v12 }
  0x3a   :  { %v90_v3 = vmul.f32 1.442695, %v89_v2  ;;  %p250_p13 = por %p249_p12, %p248_p11 }
  0x3b   :  { %v123_v24 = vadd.s32 %v122_v18, %v121_v17  ;;  %v103_v26 = vmul.f32 0.5, %v102_v21 }
  0x3c   :  { %173 = vpow2.f32 %v90_v3  ;;  %p251_p0 = pnand %p250_p13, %p244_p10 }
  0x3d   :  { %vm124_vm2 = vcmp.lt.s32.totalorder %v123_v24, 64 }
  0x46   :  { %v174_v4 = vpop.eup %173 }
  0x47   :  { %v92_v5 = vadd.f32 1.0, %v174_v4  ;;  %v95_v7 = vmul.f32 -0.5, %v174_v4  ;;  %v98_v14 = vand.u32 2147483647, %v174_v4 }
  0x49   :  { %175 = vlog2.f32 %v92_v5  ;;  %v96_v10 = vadd.f32 1.0, %v95_v7  ;;  %vm99_vm1 = vcmp.lt.f32.partialorder %v98_v14, 0.0004427343 }
  0x4b   :  { %v97_v16 = vmul.f32 %v174_v4, %v96_v10 }
  0x53   :  { %v176_v19 = vpop.eup %175 }
  0x54   :  { %v94_v22 = vmul.f32 0.6931472, %v176_v19 }
  0x56   :  { %v100_v23 = vsel %vm99_vm1, %v97_v16, %v94_v22 }
  0x57   :  { %v101_v25 = vadd.f32 %v100_v23, %v87_v20 }
  0x59   :  { %v104_v27 = vmul.f32 0.5, %v101_v25 }
  0x5b   :  { %v105_v28 = vadd.f32 %v104_v27, %v103_v26 }
  0x5d   :  { %v125_v29 = vsel %vm124_vm2, %v105_v28, 0.0 }
  0x5e   :  { %134 = vadd.xlane.f32.xlu0 %v125_v29 }
  0xeb   :  { %v135_v30 = vpop.xlane.xlu0 %134 }
  0xec   :  { %v136_v31 = vrot.slane %v135_v30, 4 }
  0xee   :  { %v137_v32 = vadd.f32 %v136_v31, %v135_v30 }
  0xf0   :  { %v138_v33 = vrot.slane %v137_v32, 2 }
  0xf2   :  { %v139_v34 = vadd.f32 %v138_v33, %v137_v32 }
  0xf4   :  { %v140_v35 = vrot.slane %v139_v34, 1 }
  0xf6   :  { %v141_v36 = vadd.f32 %v140_v35, %v139_v34 }
  0xf8   :  { %167 = vpush %v141_v36 }
 0x129   :  { %s168_s20 = spop %167 }
 0x12a   :  { %v143_v37 = vstv %s168_s20 }
 0x12b   :  { %144 = vst [vmem:[#allocation9] sm:$0xff] %v143_v37 }
 0x12c   :  { %254 = shalt.err (!%p251_p0)
}
 0x12d   :  { %s255_s24 = scalar_lea.hbm %s346_s3, 128 }
 0x12e   :  { %p256_p1 = scmp.ne.s32.totalorder %s346_s3, %s255_s24  ;;  %p259_p2 = scmp.lt.u32.totalorder %s255_s24, %s346_s3 }
 0x130   :  { %p261_p3 = pnand %p259_p2, %p256_p1 }
 0x132   :  { %264 = shalt.err (!%p261_p3)
}
 0x133   :  { %154 = dma.vmem_to_hbm [thread:$0]  %s152_s19, 128, %s346_s3, [#allocation5]  }
 0x134   :  { %269 = dma.done.wait [#allocation5], 128  }
 0x135   :  { %270 = vsyncadd [#allocation5], 4294967168 }
 0x136   :  { %158 = vsyncpa [#allocation4], 1 }
 0x137   :  { %159 = vsyncpa [#allocation7], 1 }
 0x138   :  { %160 = vsyncpa [#allocation5], 1 }

</bundles_post_ra>
